<compile_context>
chip_gen: v5e
topology: v5e:2x2
jax: 0.10.0
libtpu: 0.0.40
codegen_flags: <defaults>
</compile_context>

<pallas_src>
import functools

import jax
import jax.numpy as jnp
from jax import lax
from jax.experimental import pallas as pl
from jax.experimental.pallas import tpu as pltpu

_LANE = 128
_SUB = 8
_TM_MAX_SUM = 8192              # rows per grid step, mean/sum path (2-3 streams)
_TM_MAX_MAP = 4096              # rows per grid step, 'none' path   (3-4 streams)
_BLOCK_BUDGET = 32 * 1024 * 1024  # double-buffered block budget (fits v7x 64 MiB)
_UNROLL = 8


def _round_up(x, m):
    return ((x + m - 1) // m) * m


def _scale_factor(s, gamma):
    """|s|**gamma  (torch computes abs((1-pt)**gamma)); pure-VPU for small ints."""
    g = float(gamma)
    if g == int(g) and 0.0 <= g <= 8.0:
        gi = int(g)
        if gi == 0:
            return jnp.ones_like(s)
        p = s
        for _ in range(gi - 1):
            p = p * s
        return jnp.abs(p) if (gi % 2) else p
    # TODO(synk): non-integral gamma with 1-pt < 0 is NaN in torch; we return the
    # finite |1-pt|**gamma instead.
    return jnp.power(jnp.abs(s), g)


def _strip_loss(pred_ref, tgt_ref, w_ref, r0, sr, *, gamma, alpha, beta, thr,
                out_scale=1.0):
    """Elementwise focal-L2 loss for a (sr, 128) strip starting at row r0."""
    p = pred_ref[pl.ds(r0, sr), :].astype(jnp.float32)
    t = tgt_ref[pl.ds(r0, sr), :].astype(jnp.float32)
    # s = 1 - pt, with pt = where(t >= thr, p - alpha, 1 - p - beta)
    s = jnp.where(t >= thr, (1.0 + alpha) - p, p + beta)
    d = p - t
    if float(gamma) == 2.0:
        ds = d * s
        loss = ds * ds                      # == d^2 * |1-pt|^2, one mul fewer
    else:
        loss = d * d * _scale_factor(s, gamma)
    if w_ref is not None:
        loss = loss * w_ref[pl.ds(r0, sr), :].astype(jnp.float32)
    if out_scale != 1.0:
        loss = loss * jnp.float32(out_scale)
    return loss


def _sum_kernel(*refs, gamma, alpha, beta, thr, has_weight, tm, sr, p_dim,
                rows, grid0):
    """mean/sum path: writes one (p_dim,128) f32 partial per grid step."""
    if has_weight:
        pred_ref, tgt_ref, w_ref, psum_ref = refs
    else:
        pred_ref, tgt_ref, psum_ref = refs
        w_ref = None

    def strip(r0):
        return _strip_loss(pred_ref, tgt_ref, w_ref, r0, sr,
                           gamma=gamma, alpha=alpha, beta=beta, thr=thr)

    def fold(acc):  # (sr,128) -> (p_dim,128): a handful of pure vreg adds
        if sr == p_dim:
            return acc
        return jnp.sum(acc.reshape(sr // p_dim, p_dim, _LANE), axis=0)

    def accumulate(n_strips):
        if n_strips == 0:
            return jnp.zeros((sr, _LANE), jnp.float32)
        if n_strips == 1:
            return strip(0)

        def body(j, acc):
            r0 = pl.multiple_of(j * sr, sr)
            return acc + strip(r0)

        return lax.fori_loop(0, n_strips, body,
                             jnp.zeros((sr, _LANE), jnp.float32),
                             unroll=min(_UNROLL, n_strips))

    full_strips = tm // sr
    last_rows = rows - (grid0 - 1) * tm      # static, in (0, tm]

    if last_rows == tm:
        # Every block is full: no masking anywhere.
        psum_ref[0] = fold(accumulate(full_strips))
    else:
        i = pl.program_id(0)

        @pl.when(i < grid0 - 1)
        def _():
            psum_ref[0] = fold(accumulate(full_strips))

        @pl.when(i == grid0 - 1)
        def _():
            n_full = last_rows // sr
            rem = last_rows - n_full * sr
            acc = accumulate(n_full)
            if rem:
                tail = strip(n_full * sr)
                row = lax.broadcasted_iota(jnp.int32, (sr, _LANE), 0)
                acc = acc + jnp.where(row < rem, tail, 0.0)
            psum_ref[0] = fold(acc)


def _map_kernel(*refs, gamma, alpha, beta, thr, has_weight, tm, sr, out_scale):
    """reduction='none': write the per-element loss map (in out_ref.dtype)."""
    if has_weight:
        pred_ref, tgt_ref, w_ref, out_ref = refs
    else:
        pred_ref, tgt_ref, out_ref = refs
        w_ref = None

    def store(r0):
        out_ref[pl.ds(r0, sr), :] = _strip_loss(
            pred_ref, tgt_ref, w_ref, r0, sr, gamma=gamma, alpha=alpha,
            beta=beta, thr=thr, out_scale=out_scale).astype(out_ref.dtype)

    n_strips = tm // sr
    if n_strips == 1:
        store(0)
    else:
        def body(j, carry):
            store(pl.multiple_of(j * sr, sr))
            return carry

        lax.fori_loop(0, n_strips, body, jnp.int32(0),
                      unroll=min(_UNROLL, n_strips))


def _prep(x, pad):
    x = jnp.reshape(x, (-1,))
    if pad:                      # only when numel % 128 != 0 (rare)
        x = jnp.pad(x, (0, pad))
    return x.reshape(-1, _LANE)


def _pick_tiling(rows, bytes_per_row, tm_max):
    if rows <= _SUB:
        tm = rows                            # single (rows,128) block
    else:
        tm_budget = max(_SUB, _BLOCK_BUDGET // (2 * bytes_per_row))
        tm_two = _round_up(pl.cdiv(rows, 2), _SUB)   # >=2 grid steps (v7x megacore)
        tm = min(int(tm_max), tm_budget, tm_two)
        tm = max(_SUB, (tm // _SUB) * _SUB)
    # strip rows for the in-kernel loop (more rows => more independent acc chains)
    if tm % 32 == 0:
        sr = 32
    elif tm % 16 == 0:
        sr = 16
    elif tm % _SUB == 0:
        sr = _SUB
    else:
        sr = tm
    grid0 = pl.cdiv(rows, tm)
    return tm, sr, grid0


def focal_l2_loss_pallas(pred, target, weight=None, *, gamma=2.0, alpha=0.1,
                         beta=0.02, target_thr=0.01, reduction="mean",
                         avg_factor=None, loss_weight=1.0, _tm_max=None):
    assert gamma >= 0 and alpha >= 0 and beta >= 0
    assert pred.shape == target.shape and pred.size > 0
    if weight is not None:
        assert weight.shape == pred.shape
    if reduction not in ("none", "mean", "sum"):
        raise ValueError(f"invalid reduction: {reduction}")
    if avg_factor is not None and reduction == "sum":
        raise ValueError('avg_factor can not be used with reduction="sum"')

    orig_shape = pred.shape
    n = pred.size
    pad = (-n) % _LANE           # usually 0; only a <128-element tail is padded

    pred_p = _prep(pred, pad)
    tgt_p = _prep(target, pad)
    inputs = [pred_p, tgt_p]
    has_weight = weight is not None
    if has_weight:
        inputs.append(_prep(weight, pad))
    rows = pred_p.shape[0]

    is_none = reduction == "none"
    out_dtype = (pred.dtype if jnp.issubdtype(pred.dtype, jnp.floating)
                 else jnp.float32)

    in_row_bytes = sum(_LANE * jnp.dtype(x.dtype).itemsize for x in inputs)
    out_row_bytes = _LANE * jnp.dtype(out_dtype).itemsize if is_none else 0
    tm_max = _tm_max if _tm_max is not None else (
        _TM_MAX_MAP if is_none else _TM_MAX_SUM)
    tm, sr, grid0 = _pick_tiling(rows, in_row_bytes + out_row_bytes, tm_max)

    tile_spec = pl.BlockSpec((tm, _LANE), lambda i: (i, 0))
    in_specs = [tile_spec] * len(inputs)

    int_gamma = float(gamma) == int(float(gamma))
    flops = (9 + (1 if has_weight else 0)) * n
    transc = 0 if int_gamma else n
    in_bytes = sum(int(x.size) * jnp.dtype(x.dtype).itemsize for x in inputs)

    vmem_limit = int(2 * (in_row_bytes + out_row_bytes) * tm + (16 << 20))
    cp = pltpu.CompilerParams(dimension_semantics=("parallel",),
                              vmem_limit_bytes=vmem_limit)

    params = dict(gamma=float(gamma), alpha=float(alpha), beta=float(beta),
                  thr=float(target_thr), has_weight=has_weight, tm=tm, sr=sr)

    if is_none:
        out_bytes = rows * _LANE * jnp.dtype(out_dtype).itemsize
        kernel = functools.partial(_map_kernel, out_scale=float(loss_weight),
                                   **params)
        loss_map = pl.pallas_call(
            kernel,
            out_shape=jax.ShapeDtypeStruct((rows, _LANE), out_dtype),
            grid=(grid0,),
            in_specs=in_specs,
            out_specs=pl.BlockSpec((tm, _LANE), lambda i: (i, 0)),
            compiler_params=cp,
            cost_estimate=pl.CostEstimate(flops=flops, transcendentals=transc,
                                          bytes_accessed=in_bytes + out_bytes),
        )(*inputs)
        if pad:
            return loss_map.reshape(-1)[:n].reshape(orig_shape)
        return loss_map.reshape(orig_shape)

    p_dim = min(_SUB, sr)
    out_bytes = grid0 * p_dim * _LANE * 4
    kernel = functools.partial(_sum_kernel, rows=rows, grid0=grid0,
                               p_dim=p_dim, **params)
    psums = pl.pallas_call(
        kernel,
        out_shape=jax.ShapeDtypeStruct((grid0, p_dim, _LANE), jnp.float32),
        grid=(grid0,),
        in_specs=in_specs,
        out_specs=pl.BlockSpec((1, p_dim, _LANE), lambda i: (i, 0, 0)),
        compiler_params=cp,
        cost_estimate=pl.CostEstimate(flops=flops, transcendentals=transc,
                                      bytes_accessed=in_bytes + out_bytes),
    )(*inputs)
    total = jnp.sum(psums)

    if reduction == "sum":
        return loss_weight * total
    denom = float(n) if avg_factor is None else avg_factor
    return loss_weight * total / denom


class FocalL2Loss:
    """JAX/Pallas port of mmdet FocalL2Loss (sigmoid variant only)."""

    def __init__(self, use_sigmoid=True, gamma=2.0, alpha=0.1, beta=0.02,
                 target_thr=0.01, reduction="mean", loss_weight=1.0, **kwargs):
        assert use_sigmoid is True, "Only sigmoid focal loss supported now."
        self.gamma = gamma
        self.alpha = alpha
        self.beta = beta
        self.target_thr = target_thr
        self.reduction = reduction
        self.loss_weight = loss_weight

    def __call__(self, pred, target, weight=None, avg_factor=None,
                 reduction_override=None):
        assert reduction_override in (None, "none", "mean", "sum")
        reduction = reduction_override if reduction_override else self.reduction
        return focal_l2_loss_pallas(
            pred, target, weight,
            gamma=self.gamma, alpha=self.alpha, beta=self.beta,
            target_thr=self.target_thr, reduction=reduction,
            avg_factor=avg_factor, loss_weight=self.loss_weight)


def _ref_focal_l2(pred, target, gamma, alpha, beta, thr):
    pred = pred.astype(jnp.float32)
    target = target.astype(jnp.float32)
    pt = jnp.where(target >= thr, pred - alpha, 1.0 - pred - beta)
    scale = jnp.abs((1.0 - pt) ** gamma)
    return (pred - target) ** 2 * scale


if __name__ == "__main__":
    key = jax.random.PRNGKey(0)
    k1, k2, k3 = jax.random.split(key, 3)
    # heatmap-like predictions/targets in [0, 1], NCHW
    pred = jax.random.uniform(k1, (2, 4, 16, 16), dtype=jnp.float32)
    target = jax.random.uniform(k2, (2, 4, 16, 16), dtype=jnp.float32)
    wgt = jax.random.uniform(k3, (2, 4, 16, 16), dtype=jnp.float32)

    loss_mod = FocalL2Loss(gamma=2.0, alpha=0.1, beta=0.02,
                           target_thr=0.01, reduction="mean", loss_weight=1.0)

    # mean (no weight)
    out = jax.block_until_ready(loss_mod(pred, target))
    ref = jnp.mean(_ref_focal_l2(pred, target, 2.0, 0.1, 0.02, 0.01))
    assert jnp.allclose(out, ref, rtol=1e-5, atol=1e-6), (out, ref)

    # mean (with weight) -> 3-input sum kernel
    out_w = jax.block_until_ready(loss_mod(pred, target, weight=wgt))
    ref_w = jnp.mean(_ref_focal_l2(pred, target, 2.0, 0.1, 0.02, 0.01) * wgt)
    assert jnp.allclose(out_w, ref_w, rtol=1e-5, atol=1e-6), (out_w, ref_w)

    # sum
    out_s = jax.block_until_ready(loss_mod(pred, target, reduction_override="sum"))
    ref_s = jnp.sum(_ref_focal_l2(pred, target, 2.0, 0.1, 0.02, 0.01))
    assert jnp.allclose(out_s, ref_s, rtol=1e-5, atol=1e-4), (out_s, ref_s)

    # 'none' reduction path (map kernel)
    out_n = jax.block_until_ready(loss_mod(pred, target, reduction_override="none"))
    ref_n = _ref_focal_l2(pred, target, 2.0, 0.1, 0.02, 0.01)
    assert out_n.shape == pred.shape
    assert jnp.allclose(out_n, ref_n, rtol=1e-5, atol=1e-6)

    # larger input: exercises the 32-row strip fori_loop + fold path
    p_big = jax.random.uniform(k1, (2, 4, 64, 64), dtype=jnp.float32)
    t_big = jax.random.uniform(k2, (2, 4, 64, 64), dtype=jnp.float32)
    out_big = jax.block_until_ready(
        focal_l2_loss_pallas(p_big, t_big, reduction="mean"))
    ref_big = jnp.mean(_ref_focal_l2(p_big, t_big, 2.0, 0.1, 0.02, 0.01))
    assert jnp.allclose(out_big, ref_big, rtol=1e-5, atol=1e-6), (out_big, ref_big)

    # ragged rows (rows % tm != 0): masked partial-strip tail, n_full == 0
    p_r = jax.random.uniform(k1, (2, 3, 16, 16), dtype=jnp.float32)
    t_r = jax.random.uniform(k2, (2, 3, 16, 16), dtype=jnp.float32)
    out_r = jax.block_until_ready(focal_l2_loss_pallas(p_r, t_r, reduction="mean"))
    ref_r = jnp.mean(_ref_focal_l2(p_r, t_r, 2.0, 0.1, 0.02, 0.01))
    assert jnp.allclose(out_r, ref_r, rtol=1e-5, atol=1e-6), (out_r, ref_r)

    # ragged rows with full strips + partial strip in the tail block; 'none' too
    p_q = jax.random.uniform(k1, (2, 3, 40, 40), dtype=jnp.float32)
    t_q = jax.random.uniform(k2, (2, 3, 40, 40), dtype=jnp.float32)
    out_q = jax.block_until_ready(focal_l2_loss_pallas(p_q, t_q, reduction="sum"))
    ref_q = jnp.sum(_ref_focal_l2(p_q, t_q, 2.0, 0.1, 0.02, 0.01))
    assert jnp.allclose(out_q, ref_q, rtol=1e-5, atol=1e-4), (out_q, ref_q)
    out_qn = jax.block_until_ready(focal_l2_loss_pallas(p_q, t_q, reduction="none"))
    assert jnp.allclose(out_qn, _ref_focal_l2(p_q, t_q, 2.0, 0.1, 0.02, 0.01),
                        rtol=1e-5, atol=1e-6)

    # tiny input with numel % 128 != 0 -> lane-pad + rows<8 single-block path
    p_t = jax.random.uniform(k1, (3, 5, 7), dtype=jnp.float32)
    t_t = jax.random.uniform(k2, (3, 5, 7), dtype=jnp.float32)
    out_t = jax.block_until_ready(focal_l2_loss_pallas(p_t, t_t, reduction="mean"))
    ref_t = jnp.mean(_ref_focal_l2(p_t, t_t, 2.0, 0.1, 0.02, 0.01))
    assert jnp.allclose(out_t, ref_t, rtol=1e-5, atol=1e-6), (out_t, ref_t)
    out_tn = jax.block_until_ready(focal_l2_loss_pallas(p_t, t_t, reduction="none"))
    assert out_tn.shape == p_t.shape
    assert jnp.allclose(out_tn, _ref_focal_l2(p_t, t_t, 2.0, 0.1, 0.02, 0.01),
                        rtol=1e-5, atol=1e-6)

    # bf16 inputs: f32 in-kernel math, bf16 map writeback
    p_bf = pred.astype(jnp.bfloat16)
    t_bf = target.astype(jnp.bfloat16)
    out_bf = jax.block_until_ready(focal_l2_loss_pallas(p_bf, t_bf, reduction="mean"))
    ref_bf = jnp.mean(_ref_focal_l2(p_bf, t_bf, 2.0, 0.1, 0.02, 0.01))
    assert jnp.allclose(out_bf, ref_bf, rtol=1e-5, atol=1e-6), (out_bf, ref_bf)
    out_bfn = jax.block_until_ready(
        focal_l2_loss_pallas(p_bf, t_bf, reduction="none"))
    assert out_bfn.dtype == jnp.bfloat16
    assert jnp.allclose(out_bfn.astype(jnp.float32),
                        _ref_focal_l2(p_bf, t_bf, 2.0, 0.1, 0.02, 0.01),
                        rtol=2e-2, atol=1e-3)

    print("KERNEL_OK")
</pallas_src>

<mosaic_0001>
module attributes {stable_mosaic.version = 11 : i64} {
  func.func @_sum_kernel(%arg0: i32, %arg1: memref<8x128xf32, #tpu.memory_space<vmem>>, %arg2: memref<8x128xf32, #tpu.memory_space<vmem>>, %arg3: memref<1x8x128xf32, #tpu.memory_space<vmem>>) attributes {dimension_semantics = [#tpu.dimension_semantics<parallel>], iteration_bounds = array<i64: 2>, scalar_prefetch = 0 : i64, scratch_operands = 0 : i64, tpu.core_type = #tpu.core_type<tc>, window_params = [{transform_indices = @transform_0, window_bounds = array<i64: 8, 128>}, {transform_indices = @transform_1, window_bounds = array<i64: 8, 128>}, {transform_indices = @transform_2, window_bounds = array<i64: 1, 8, 128>}]} {
    %c0 = arith.constant 0 : index
    %c0_0 = arith.constant 0 : index
    %0 = vector.load %arg1[%c0, %c0_0] : memref<8x128xf32, #tpu.memory_space<vmem>>, vector<8x128xf32>
    %c0_1 = arith.constant 0 : index
    %c0_2 = arith.constant 0 : index
    %1 = vector.load %arg2[%c0_1, %c0_2] : memref<8x128xf32, #tpu.memory_space<vmem>>, vector<8x128xf32>
    %cst = arith.constant 0.00999999977 : f32
    %2 = vector.broadcast %cst : f32 to vector<8x128xf32>
    %3 = arith.cmpf oge, %1, %2 : vector<8x128xf32>
    %cst_3 = arith.constant 1.100000e+00 : f32
    %4 = vector.broadcast %cst_3 : f32 to vector<8x128xf32>
    %5 = arith.subf %4, %0 : vector<8x128xf32>
    %cst_4 = arith.constant 2.000000e-02 : f32
    %6 = vector.broadcast %cst_4 : f32 to vector<8x128xf32>
    %7 = arith.addf %0, %6 : vector<8x128xf32>
    %8 = arith.select %3, %5, %7 : vector<8x128xi1>, vector<8x128xf32>
    %9 = arith.subf %0, %1 : vector<8x128xf32>
    %10 = arith.mulf %9, %8 : vector<8x128xf32>
    %11 = arith.mulf %10, %10 : vector<8x128xf32>
    %c0_5 = arith.constant 0 : index
    %c0_6 = arith.constant 0 : index
    %c0_7 = arith.constant 0 : index
    %12 = vector.load %arg3[%c0_5, %c0_6, %c0_7] : memref<1x8x128xf32, #tpu.memory_space<vmem>>, vector<1x8x128xf32>
    %13 = vector.shape_cast %12 : vector<1x8x128xf32> to vector<8x128xf32>
    %14 = vector.shape_cast %11 : vector<8x128xf32> to vector<1x8x128xf32>
    tpu.vector_store %arg3[%c0_5, %c0_6, %c0_7], %14 {strides = array<i32>} : memref<1x8x128xf32, #tpu.memory_space<vmem>>, vector<1x8x128xf32>,
    return
  }
  func.func @transform_0(%arg0: i32) -> (i32, i32) {
    %c0_i32 = arith.constant 0 : i32
    %c0_i32_0 = arith.constant 0 : i32
    return %arg0, %c0_i32 : i32, i32
  }
  func.func @transform_1(%arg0: i32) -> (i32, i32) {
    %c0_i32 = arith.constant 0 : i32
    %c0_i32_0 = arith.constant 0 : i32
    return %arg0, %c0_i32 : i32, i32
  }
  func.func @transform_2(%arg0: i32) -> (i32, i32, i32) {
    %c0_i32 = arith.constant 0 : i32
    %c0_i32_0 = arith.constant 0 : i32
    %c0_i32_1 = arith.constant 0 : i32
    return %arg0, %c0_i32, %c0_i32_0 : i32, i32, i32
  }
}

</mosaic_0001>

<bundles_post_ra>
// kernel: tpu_custom_call.1
= control target key start
LH: loop header
LB: loop body
LE: loop exit
PB: predicated region body
PF: predicated region fallthrough
CT: control target
= control target key end

     0   :  { %7 = vsyncpa [#allocation3], 0  ;;  %s692_s0 = inlined_call_operand.hbm [shape: f32[16,128], index: 0, kind: input, shape index: {}]   ;;  %s693_s1 = inlined_call_operand.hbm [shape: f32[16,128], index: 1, kind: input, shape index: {}]   ;;  %s694_s2 = inlined_call_operand.hbm [shape: f32[2,8,128], index: 2, kind: output, shape index: {}]  }
   0x1   :  { %9 = vsyncpa [#allocation3 + $0x1], 0 }
   0x2   :  { %10 = vsyncpa [#allocation6], 0 }
   0x3   :  { %12 = vsyncpa [#allocation6 + $0x1], 0 }
   0x4   :  { %13 = vsyncpa [#allocation4], 0 }
   0x5   :  { %15 = vsyncpa [#allocation4 + $0x1], 0  ;;  %s532_s9 = smov 0   ;;  %s534_s10 = smov 0  }
   0x6   :  { %s536_s11 = smov 0   ;;  %s538_s12 = smov 0  }
   0x7 LB: > { %s553_s13 = sadd.s32 4294967295, %s515_s12   ;;  %s319_s14 = sadd.s32 4294967294, %s515_s12   ;;  %s515_s12 = sphi %s538_s12, %s705_s12   ;;  %s511_s11 = sphi %s536_s11, %s704_s11   ;;  %s507_s10 = sphi %s534_s10, %s703_s10   ;;  %s503_s9 = sphi %s532_s9, %s702_s9  }
   0x8   : > { %s557_s15 = sadd.s32 1, %s515_s12   ;;  %s28_s16 = sadd.s32 1, %s511_s11 }
   0x9   : > { %s25_s17 = ssub.s32 %s515_s12, %s557_s15  ;;  %p35_p0 = scmp.ne.s32.totalorder %s511_s11, %s507_s10 }
   0xa   : > { %p26_p1 = scmp.eq.s32.totalorder %s25_s17, 0  ;;  %p36_p2 = scmp.eq.s32.totalorder %s515_s12, 0 }
   0xb   : > { %p41_p3 = scmp.ne.s32.totalorder %s507_s10, %s503_s9  ;;  %p42_p4 = scmp.eq.s32.totalorder %s553_s13, 0 }
   0xc   : > { %s569_s18 = scalar_select %p26_p1, %s511_s11, %s28_s16  }
   0xd   : > { %p571_p5 = por %p36_p2, %p35_p0  ;;  %p575_p6 = por %p42_p4, %p41_p3 }
   0xe   : > { %p91_p7 = scmp.eq.s32.totalorder %s553_s13, 1  ;;  %p97_p8 = scmp.eq.s32.totalorder %s319_s14, 1 }
   0xf   : > { %p351_p10 = scmp.lt.s32.totalorder %s515_s12, 2  ;;  %s591_s23 = sand.u32 1, %s511_s11  }
  0x10   : > { %p582_p11 = por %p91_p7, %p35_p0  ;;  %p586_p12 = por %p97_p8, %p41_p3 }
  0x11   : > { %s323_s24 = sshll.u32 %s515_s12, 3  ;;  %s322_s25 = sshll.u32 %s591_s23, 3 }
  0x12   : > { %s125_s28 = scalar_lea.hbm %s692_s0, %s323_s24  ;;  %s121_s30 = scalar_lea.vmem [#allocation2], %s322_s25 }
  0x13   : > { %s127_s29 = sshll.u32 %s125_s28, 4  ;;  %s129_s3 = sshll.u32 %s121_s30, 4  ;;  %s128_s29 = int_to_ptr.hbm [resolvable:$true] %s127_s29  ;;  %s130_s3 = int_to_ptr.vmem [resolvable:$true] %s129_s3 }
  0x14   : > { %p600_p13 = pnand %p351_p10, %p571_p5  ;;  %p326_p0 = scmp.ge.s32.totalorder %s515_s12, 1 }
  0x15   : > { %p153_p1 = scmp.lt.s32.totalorder %s515_s12, 3  ;;  %s118_s5 = scalar_lea.sflag [#allocation3], %s591_s23 }
  0x16   : > { %s385_s6 = sshra.s32 %s128_s29, 4  ;;  %p389_p3 = pneg %p600_p13  ;;  %s386_s6 = int_to_ptr.hbm [resolvable:$true] %s385_s6 }
  0x17   : > { %s387_s7 = scalar_lea.hbm %s386_s6, 8  ;;  %s392_s16 = scalar_lea.hbm %s692_s0, 16 }
  0x18   : > { %p388_p2 = scmp.ne.s32.totalorder %s386_s6, %s387_s7  ;;  %p393_p5 = scmp.lt.s32.totalorder %s386_s6, %s692_s0 }
  0x19   : > { %p394_p8 = scmp.lt.s32.totalorder %s392_s16, %s387_s7 }
  0x1a   : > { %p390_p4 = pnand %p389_p3, %p388_p2 }
  0x1b   : > { %p395_p10 = por %p394_p8, %p393_p5 }
  0x1c   : > { %p391_p7 = pneg %p390_p4 }
  0x1e   : > { %p396_p9 = pnand %p395_p10, %p391_p7 }
  0x20   : > { %399 = shalt.err (!%p396_p9)
}
  0x21   : > { %343 = dma.hbm_to_vmem [thread:$0]  (!%p600_p13), %s128_s29, 128, %s130_s3, %s118_s5  }
  0x22   : > { %p624_p2 = pnand %p326_p0, %p153_p1  ;;  %s144_s30 = scalar_lea.hbm %s693_s1, %s323_s24 }
  0x23   : > { %s146_s6 = sshll.u32 %s144_s30, 4  ;;  %s140_s7 = scalar_lea.vmem [#allocation5], %s322_s25  ;;  %s147_s6 = int_to_ptr.hbm [resolvable:$true] %s146_s6 }
  0x24   : > { %s148_s8 = sshll.u32 %s140_s7, 4  ;;  %s137_s14 = scalar_lea.sflag [#allocation6], %s591_s23  ;;  %s149_s8 = int_to_ptr.vmem [resolvable:$true] %s148_s8 }
  0x25   : > { %s415_s16 = sshra.s32 %s147_s6, 4  ;;  %s422_s5 = scalar_lea.hbm %s693_s1, 16  ;;  %s416_s16 = int_to_ptr.hbm [resolvable:$true] %s415_s16 }
  0x26   : > { %s417_s17 = scalar_lea.hbm %s416_s16, 8  ;;  %p423_p4 = scmp.lt.s32.totalorder %s416_s16, %s693_s1 }
  0x27   : > { %p418_p9 = scmp.ne.s32.totalorder %s416_s16, %s417_s17  ;;  %p424_p7 = scmp.lt.s32.totalorder %s422_s5, %s417_s17 }
  0x29   : > { %p420_p0 = pnand %p418_p9, %p389_p3  ;;  %p425_p5 = por %p424_p7, %p423_p4 }
  0x2b   : > { %p421_p1 = pneg %p420_p0 }
  0x2d   : > { %p426_p8 = pnand %p425_p5, %p421_p1 }
  0x2f   : > { %429 = shalt.err (!%p426_p8)
}
  0x30   : > { %346 = dma.hbm_to_vmem [thread:$0]  (!%p600_p13), %s147_s6, 128, %s149_s8, %s137_s14  }
  0x31   : > { %157 = sbr.rel (%p624_p2) target bundleno = 72 (0x48), region = 28  ;;  %s646_s23 = sand.u32 (!%p624_p2), 1, %s507_s10  }
  0x32   : > { %s327_s25 = sshll.u32 (!%p624_p2), %s646_s23, 3  ;;  %s160_s27 = scalar_lea.sflag (!%p624_p2), [#allocation3], %s646_s23 }
  0x33   : > { %s163_s28 = scalar_lea.vmem (!%p624_p2), [#allocation2], %s327_s25 }
  0x36   : > { %490 = dma.done.wait (%p575_p6), %s160_s27, 128  }
  0x37   : > { %492 = vsyncadd (%p575_p6), %s160_s27, 4294967168  ;;  %s170_s4 = scalar_lea.sflag [#allocation6], %s646_s23  ;;  %s173_s30 = scalar_lea.vmem [#allocation5], %s327_s25 }
  0x38   : > { %494 = dma.done.wait (%p575_p6), %s170_s4, 128  }
  0x39   : > { %496 = vsyncadd (%p575_p6), %s170_s4, 4294967168  ;;  %s331_s26 = sshll.u32 %s553_s13, 3  ;;  %v200_v0 = vld [vmem:[%s163_s28] sm:$0xff]  ;;  %v201_v1 = vld [vmem:[%s173_s30] sm:$0xff]  ;;  %s199_s14 = scalar_lea.vmem [#allocation7], %s327_s25 }
  0x3a   : > { %s221_s8 = scalar_lea.hbm %s694_s2, %s331_s26  ;;  %vm202_vm0 = vcmp.ge.f32.partialorder %v201_v1, 0.01  ;;  %v203_v2 = vsub.f32 1.1, %v200_v0  ;;  %v204_v3 = vadd.f32 0.02, %v200_v0  ;;  %v206_v4 = vsub.f32 %v200_v0, %v201_v1 }
  0x3b   : > { %s223_s16 = sshll.u32 %s199_s14, 4  ;;  %s225_s17 = sshll.u32 %s221_s8, 4  ;;  %s224_s16 = int_to_ptr.vmem [resolvable:$true] %s223_s16  ;;  %s226_s17 = int_to_ptr.hbm [resolvable:$true] %s225_s17 }
  0x3c   : > { %v205_v5 = vsel %vm202_vm0, %v203_v2, %v204_v3  ;;  %s211_s13 = scalar_lea.sflag [#allocation4], %s646_s23  ;;  %s459_s20 = sshra.s32 %s226_s17, 4  ;;  %s460_s20 = int_to_ptr.hbm [resolvable:$true] %s459_s20 }
  0x3d   : > { %v207_v6 = vmul.f32 %v206_v4, %v205_v5  ;;  %s461_s29 = scalar_lea.hbm %s460_s20, 8  ;;  %s465_s19 = scalar_lea.hbm %s694_s2, 16 }
  0x3e   : > { %p462_p6 = scmp.ne.s32.totalorder %s460_s20, %s461_s29  ;;  %p466_p10 = scmp.lt.s32.totalorder %s460_s20, %s694_s2 }
  0x3f   : > { %v208_v7 = vmul.f32 %v207_v6, %v207_v6  ;;  %p467_p2 = scmp.lt.s32.totalorder %s465_s19, %s461_s29 }
  0x40   : > { %p463_p13 = pnand %p462_p6, %p582_p11 }
  0x41   : > { %209 = vst [vmem:[%s199_s14] sm:$0xff] %v208_v7  ;;  %p468_p9 = por %p467_p2, %p466_p10 }
  0x42   : > { %p464_p3 = pneg %p463_p13 }
  0x44   : > { %p469_p0 = pnand %p468_p9, %p464_p3 }
  0x46   : > { %472 = shalt.err (!%p469_p0)
}
  0x47   : > { %338 = dma.vmem_to_hbm [thread:$0]  (%p582_p11), %s224_s16, 128, %s226_s17, %s211_s13  }
  0x48 PF: > { %s237_s23 = sand.u32 1, %s503_s9   ;;  %p701_p1 = scmp.ge.s32.totalorder %s515_s12, 2 }
  0x49   : > { %s238_s27 = scalar_lea.sflag [#allocation4], %s237_s23 }
  0x4a   : > { %p348_p4 = pnand %p701_p1, %p586_p12 }
  0x4c   : > { %p349_p7 = pneg %p348_p4 }
  0x4e   : > { %498 = dma.done.wait (%p349_p7), %s238_s27, 128  }
  0x4f   : > { %500 = vsyncadd (%p349_p7), %s238_s27, 4294967168  ;;  %p18_p5 = scmp.ge.s32.totalorder %s557_s15, 4   ;;  %s702_s9 = smov %s507_s10 }
  0x50   : > { %s703_s10 = smov %s511_s11  ;;  %s704_s11 = smov %s569_s18 }
  0x51   : > { %s705_s12 = smov %s557_s15  ;;  %20 = sbr.rel (!%p18_p5) target bundleno = 7 (0x7), region = 86 }
  0x56   :  { %244 = vsyncpa [#allocation3], 1 }
  0x57   :  { %246 = vsyncpa [#allocation3 + $0x1], 1 }
  0x58   :  { %247 = vsyncpa [#allocation6], 1 }
  0x59   :  { %249 = vsyncpa [#allocation6 + $0x1], 1 }
  0x5a   :  { %250 = vsyncpa [#allocation4], 1 }
  0x5b   :  { %252 = vsyncpa [#allocation4 + $0x1], 1 }

</bundles_post_ra>
